<compile_context>
chip_gen: v6e
topology: v6e:2x2x1
jax: 0.10.0
libtpu: 0.0.40
codegen_flags: <defaults>
</compile_context>

<pallas_src>
import functools
import math

import jax
import jax.numpy as jnp
from jax import lax
from jax.experimental import pallas as pl
from jax.experimental.pallas import tpu as pltpu


def _round_up(n, m):
    return ((n + m - 1) // m) * m


def _vmem_limit_bytes(estimate):
    # v5e's scoped-VMEM default is only 16 MiB; raise it explicitly.  32 MiB is
    # within every generation's physical VMEM (v7x: 64 MiB physical).
    return int(max(estimate, 32 * 1024 * 1024))


# --------------------------------------------------------------------------- #
# Kernel 1: LayerNorm -> multi-head attention -> output projection -> +residual
# --------------------------------------------------------------------------- #
def _attention_kernel(x_ref, g_ref, beta_ref,
                      wq_ref, bq_ref, wk_ref, bk_ref, wv_ref, bv_ref,
                      wo_ref, bo_ref, o_ref, acc_ref, *, scale, eps):
    h_id = pl.program_id(1)
    last_h = pl.num_programs(1) - 1

    x = x_ref[...]                                  # (S, dim), input dtype
    xf = x.astype(jnp.float32)

    # LayerNorm (PyTorch semantics: biased variance, eps inside sqrt), f32 math.
    mu = jnp.mean(xf, axis=-1, keepdims=True)
    var = jnp.mean(jnp.square(xf - mu), axis=-1, keepdims=True)
    xn = (xf - mu) * lax.rsqrt(var + eps)
    xn = xn * g_ref[...].astype(jnp.float32) + beta_ref[...].astype(jnp.float32)

    # Feed the MXU at the weights' dtype (bf16 weights stay bf16); f32 accumulate.
    wdt = wq_ref.dtype
    xn_c = xn.astype(wdt)
    q = jnp.dot(xn_c, wq_ref[...], preferred_element_type=jnp.float32)
    q = q + bq_ref[...].astype(jnp.float32)                     # (S, dim_head)
    k = jnp.dot(xn_c, wk_ref[...], preferred_element_type=jnp.float32)
    k = k + bk_ref[...].astype(jnp.float32)
    v = jnp.dot(xn_c, wv_ref[...], preferred_element_type=jnp.float32)
    v = v + bv_ref[...].astype(jnp.float32)

    # Scores + softmax in f32.  The full (S, S) tile is materialized; fine for
    # ViT-scale sequence lengths.
    # TODO(synk): tile the KV axis (flash-style online softmax) for long sequences.
    dots = lax.dot_general(q, k, (((1,), (1,)), ((), ())),
                           preferred_element_type=jnp.float32) * scale
    m = jnp.max(dots, axis=-1, keepdims=True)
    e = jnp.exp(dots - m)
    p = e / jnp.sum(e, axis=-1, keepdims=True)

    out_h = jnp.dot(p.astype(wdt), v.astype(wdt),
                    preferred_element_type=jnp.float32)          # (S, dim_head)
    contrib = jnp.dot(out_h.astype(wdt), wo_ref[...],
                      preferred_element_type=jnp.float32)        # (S, dim)

    @pl.when(h_id == 0)
    def _():
        # residual + output-projection bias, added exactly once per batch tile
        acc_ref[...] = xf + bo_ref[...].astype(jnp.float32)

    acc_ref[...] += contrib

    @pl.when(h_id == last_h)
    def _():
        o_ref[...] = acc_ref[...].astype(o_ref.dtype)


def prenorm_attention(x_bsd, p, *, eps=1e-5):
    """x_bsd: (batch, seq, dim).  Returns x + to_out(MHA(LayerNorm(x)))."""
    B, S, dim = x_bsd.shape
    heads, dim_head = int(p["heads"]), int(p["dim_head"])
    inner = heads * dim_head
    assert inner == dim, "the module's view() requires heads * dim_head == dim"
    scale = float(dim_head) ** -0.5

    project_out = not (heads == 1 and dim_head == dim)
    if project_out:
        wo, bo = p["wo"], p["bo"]
    else:
        # to_out is nn.Identity(): equivalent to an identity projection.
        wo = jnp.eye(dim, dtype=p["wq"].dtype)
        bo = jnp.zeros((dim,), dtype=p["wq"].dtype)

    # Reshape weights so each grid step DMAs only its head's slice while every
    # BlockSpec keeps a full-extent (lane-dense) last dimension.
    def split_w_in(w):    # (dim, inner) -> (heads, dim, dim_head)
        return w.reshape(dim, heads, dim_head).transpose(1, 0, 2)

    def split_b_in(b):    # (inner,) -> (heads, 1, dim_head)
        return b.reshape(heads, 1, dim_head)

    wq_h, wk_h, wv_h = split_w_in(p["wq"]), split_w_in(p["wk"]), split_w_in(p["wv"])
    bq_h, bk_h, bv_h = split_b_in(p["bq"]), split_b_in(p["bk"]), split_b_in(p["bv"])
    wo_h = wo.reshape(heads, dim_head, dim)
    bo_2d = bo.reshape(1, dim)
    g_2d = p["ln1_g"].reshape(1, dim)
    beta_2d = p["ln1_b"].reshape(1, dim)

    kernel = functools.partial(_attention_kernel, scale=scale, eps=eps)

    itemsize = jnp.dtype(x_bsd.dtype).itemsize
    w_itemsize = jnp.dtype(wq_h.dtype).itemsize
    flops = int(B * heads * 2 * S * dim_head * (3 * dim + 2 * S + dim))
    cost = pl.CostEstimate(
        flops=flops,
        transcendentals=int(B * heads * S * S),
        bytes_accessed=int(2 * B * S * dim * itemsize
                           + (4 * dim * inner + 3 * inner + dim) * w_itemsize),
    )
    vmem_est = (
        4 * S * dim * itemsize                                   # x & out tiles (x2 buf)
        + 2 * (4 * dim * dim_head + 3 * dim_head + 2 * dim) * w_itemsize
        + 4 * S * (dim + 3 * dim_head + S + dim)                 # f32 intermediates + acc
    )

    return pl.pallas_call(
        kernel,
        out_shape=jax.ShapeDtypeStruct((B, S, dim), x_bsd.dtype),
        grid_spec=pltpu.PrefetchScalarGridSpec(
            num_scalar_prefetch=0,
            grid=(B, heads),
            in_specs=[
                pl.BlockSpec((None, S, dim), lambda b, h: (b, 0, 0)),         # x
                pl.BlockSpec((1, dim), lambda b, h: (0, 0)),                  # ln1 gamma
                pl.BlockSpec((1, dim), lambda b, h: (0, 0)),                  # ln1 beta
                pl.BlockSpec((None, dim, dim_head), lambda b, h: (h, 0, 0)),  # Wq[h]
                pl.BlockSpec((None, 1, dim_head), lambda b, h: (h, 0, 0)),    # bq[h]
                pl.BlockSpec((None, dim, dim_head), lambda b, h: (h, 0, 0)),  # Wk[h]
                pl.BlockSpec((None, 1, dim_head), lambda b, h: (h, 0, 0)),    # bk[h]
                pl.BlockSpec((None, dim, dim_head), lambda b, h: (h, 0, 0)),  # Wv[h]
                pl.BlockSpec((None, 1, dim_head), lambda b, h: (h, 0, 0)),    # bv[h]
                pl.BlockSpec((None, dim_head, dim), lambda b, h: (h, 0, 0)),  # Wo[h]
                pl.BlockSpec((1, dim), lambda b, h: (0, 0)),                  # bo
            ],
            out_specs=pl.BlockSpec((None, S, dim), lambda b, h: (b, 0, 0)),
            scratch_shapes=[pltpu.VMEM((S, dim), jnp.float32)],
        ),
        compiler_params=pltpu.CompilerParams(
            dimension_semantics=("parallel", "arbitrary"),
            vmem_limit_bytes=_vmem_limit_bytes(vmem_est),
        ),
        cost_estimate=cost,
    )(x_bsd, g_2d, beta_2d, wq_h, bq_h, wk_h, bk_h, wv_h, bv_h, wo_h, bo_2d)


# --------------------------------------------------------------------------- #
# Kernel 2: LayerNorm -> Linear -> GELU -> Linear -> +residual
# --------------------------------------------------------------------------- #
def _ffn_kernel(x_ref, g_ref, beta_ref, w1_ref, b1_ref, w2_ref, b2_ref, o_ref,
                *, eps, approximate_gelu):
    x = x_ref[...]                                  # (tm, dim)
    xf = x.astype(jnp.float32)

    mu = jnp.mean(xf, axis=-1, keepdims=True)
    var = jnp.mean(jnp.square(xf - mu), axis=-1, keepdims=True)
    xn = (xf - mu) * lax.rsqrt(var + eps)
    xn = xn * g_ref[...].astype(jnp.float32) + beta_ref[...].astype(jnp.float32)

    wdt = w1_ref.dtype
    h = jnp.dot(xn.astype(wdt), w1_ref[...], preferred_element_type=jnp.float32)
    h = h + b1_ref[...].astype(jnp.float32)

    if approximate_gelu:
        # tanh-GELU uses the EUP (otherwise idle slot on v6e/v7x) but differs
        # slightly from PyTorch's exact-erf nn.GELU, so it is opt-in.
        h = jax.nn.gelu(h, approximate=True)
    else:
        h = 0.5 * h * (1.0 + lax.erf(h * jnp.float32(1.0 / math.sqrt(2.0))))

    out = jnp.dot(h.astype(wdt), w2_ref[...], preferred_element_type=jnp.float32)
    out = out + b2_ref[...].astype(jnp.float32)

    o_ref[...] = (out + xf).astype(o_ref.dtype)     # residual add, lane-dense store


def prenorm_ffn(x_bsd, p, *, tm=256, eps=1e-5, approximate_gelu=False):
    """x_bsd: (batch, seq, dim).  Returns x + FFN(LayerNorm(x))."""
    B, S, dim = x_bsd.shape
    hidden = p["w1"].shape[1]
    M = B * S

    xf = x_bsd.reshape(M, dim)

    # Large row tile keeps the MXU busy and amortizes per-grid-step overhead;
    # clamp to the (8-aligned) problem size so toy shapes run as one grid step.
    tm = min(tm, _round_up(M, 8))
    Mp = _round_up(M, tm)
    if Mp != M:
        xf = jnp.pad(xf, ((0, Mp - M), (0, 0)))     # zero rows are LayerNorm-safe

    g_2d = p["ln2_g"].reshape(1, dim)
    beta_2d = p["ln2_b"].reshape(1, dim)
    b1_2d = p["b1"].reshape(1, hidden)
    b2_2d = p["b2"].reshape(1, dim)

    kernel = functools.partial(_ffn_kernel, eps=eps, approximate_gelu=approximate_gelu)

    itemsize = jnp.dtype(xf.dtype).itemsize
    w_itemsize = jnp.dtype(p["w1"].dtype).itemsize
    wbytes = (dim * hidden + hidden * dim + hidden + 2 * dim) * w_itemsize
    cost = pl.CostEstimate(
        flops=int(4 * Mp * dim * hidden),
        transcendentals=int(Mp * hidden),
        bytes_accessed=int(2 * Mp * dim * itemsize + wbytes),
    )
    # TODO(synk): for very large dim*hidden (weights > ~8 MiB) add a hidden-dim
    # grid axis with an f32 accumulator so W1/W2 tiles fit v7x's 64 MiB VMEM.
    vmem_est = (
        4 * tm * dim * itemsize          # x & out tiles, double-buffered
        + 2 * wbytes                     # VMEM-resident weights (worst case x2)
        + 4 * tm * (hidden + 2 * dim)    # f32 intermediates
    )

    out = pl.pallas_call(
        kernel,
        out_shape=jax.ShapeDtypeStruct((Mp, dim), x_bsd.dtype),
        grid_spec=pltpu.PrefetchScalarGridSpec(
            num_scalar_prefetch=0,
            grid=(Mp // tm,),
            in_specs=[
                pl.BlockSpec((tm, dim), lambda i: (i, 0)),       # x tile
                pl.BlockSpec((1, dim), lambda i: (0, 0)),        # ln2 gamma
                pl.BlockSpec((1, dim), lambda i: (0, 0)),        # ln2 beta
                pl.BlockSpec((dim, hidden), lambda i: (0, 0)),   # W1 (full)
                pl.BlockSpec((1, hidden), lambda i: (0, 0)),     # b1
                pl.BlockSpec((hidden, dim), lambda i: (0, 0)),   # W2 (full)
                pl.BlockSpec((1, dim), lambda i: (0, 0)),        # b2
            ],
            out_specs=pl.BlockSpec((tm, dim), lambda i: (i, 0)),
        ),
        compiler_params=pltpu.CompilerParams(
            dimension_semantics=("parallel",),
            vmem_limit_bytes=_vmem_limit_bytes(vmem_est),
        ),
        cost_estimate=cost,
    )(xf, g_2d, beta_2d, p["w1"], b1_2d, p["w2"], b2_2d)

    if Mp != M:
        out = out[:M]
    return out.reshape(B, S, dim)


# --------------------------------------------------------------------------- #
# Full TransformerLayer forward
# --------------------------------------------------------------------------- #
def transformer_layer(x_sbd, params, *, tm=256, approximate_gelu=False):
    """x_sbd: (seq, batch, dim) like the PyTorch module.  Returns same shape."""
    x_bsd = jnp.transpose(x_sbd, (1, 0, 2))          # (batch, seq, dim)
    x_bsd = prenorm_attention(x_bsd, params)          # x + Attn(LN(x))
    x_bsd = prenorm_ffn(x_bsd, params, tm=tm,
                        approximate_gelu=approximate_gelu)  # x + FFN(LN(x))
    return jnp.transpose(x_bsd, (1, 0, 2))            # back to (seq, batch, dim)


# --------------------------------------------------------------------------- #
# Pure-JAX reference, mirroring the PyTorch forward exactly (dropout = 0)
# --------------------------------------------------------------------------- #
def reference_transformer_layer(x, p, *, eps=1e-5):
    S, B, dim = x.shape
    heads, dim_head = int(p["heads"]), int(p["dim_head"])
    inner = heads * dim_head

    def layernorm(y, g, b):
        mu = jnp.mean(y, axis=-1, keepdims=True)
        var = jnp.mean(jnp.square(y - mu), axis=-1, keepdims=True)
        return (y - mu) / jnp.sqrt(var + eps) * g + b

    # PreNorm(Attention) + residual
    xn = layernorm(x, p["ln1_g"], p["ln1_b"])
    q = xn @ p["wq"] + p["bq"]
    k = xn @ p["wk"] + p["bk"]
    v = xn @ p["wv"] + p["bv"]
    q = q.reshape(S, B * heads, dim_head).transpose(1, 0, 2)
    k = k.reshape(S, B * heads, dim_head).transpose(1, 2, 0)
    v = v.reshape(S, B * heads, dim_head).transpose(1, 0, 2)
    dots = jnp.einsum("bqd,bdk->bqk", q, k) * (float(dim_head) ** -0.5)
    attn = jax.nn.softmax(dots, axis=-1)
    out = jnp.einsum("bqk,bkd->bqd", attn, v)
    out = out.transpose(1, 0, 2).reshape(S, B, inner)
    if not (heads == 1 and dim_head == dim):
        out = out @ p["wo"] + p["bo"]
    x = out + x

    # PreNorm(FeedForward) + residual
    xn = layernorm(x, p["ln2_g"], p["ln2_b"])
    h = xn @ p["w1"] + p["b1"]
    h = 0.5 * h * (1.0 + lax.erf(h * (1.0 / math.sqrt(2.0))))
    ff = h @ p["w2"] + p["b2"]
    return ff + x


if __name__ == "__main__":
    # Small ViT-style TransformerLayer: seq=8, batch=2, heads=2, dim_head=64
    # -> dim = inner_dim = 128 (lane-dense), mlp_dim = 256.
    S, B = 8, 2
    HEADS, DIM_HEAD = 2, 64
    DIM = HEADS * DIM_HEAD        # module's view() requires heads*dim_head == dim
    MLP_DIM = 256

    key = jax.random.PRNGKey(0)
    ks = jax.random.split(key, 17)

    x = jax.random.normal(ks[0], (S, B, DIM), jnp.float32)   # (seq, batch, dim)

    def linear(kw, kb, fan_in, fan_out):
        bound = 1.0 / math.sqrt(fan_in)
        w = jax.random.uniform(kw, (fan_in, fan_out), jnp.float32, -bound, bound)
        b = jax.random.uniform(kb, (fan_out,), jnp.float32, -bound, bound)
        return w, b

    inner = HEADS * DIM_HEAD
    wq, bq = linear(ks[1], ks[2], DIM, inner)
    wk, bk = linear(ks[3], ks[4], DIM, inner)
    wv, bv = linear(ks[5], ks[6], DIM, inner)
    wo, bo = linear(ks[7], ks[8], inner, DIM)
    w1, b1 = linear(ks[9], ks[10], DIM, MLP_DIM)
    w2, b2 = linear(ks[11], ks[12], MLP_DIM, DIM)

    params = dict(
        heads=HEADS, dim_head=DIM_HEAD,
        ln1_g=1.0 + 0.1 * jax.random.normal(ks[13], (DIM,), jnp.float32),
        ln1_b=0.1 * jax.random.normal(ks[14], (DIM,), jnp.float32),
        ln2_g=1.0 + 0.1 * jax.random.normal(ks[15], (DIM,), jnp.float32),
        ln2_b=0.1 * jax.random.normal(ks[16], (DIM,), jnp.float32),
        wq=wq, bq=bq, wk=wk, bk=bk, wv=wv, bv=bv, wo=wo, bo=bo,
        w1=w1, b1=b1, w2=w2, b2=b2,
    )

    out = transformer_layer(x, params)
    out = jax.block_until_ready(out)

    ref = reference_transformer_layer(x, params)
    ref = jax.block_until_ready(ref)

    assert out.shape == x.shape, out.shape
    max_err = float(jnp.max(jnp.abs(out - ref)))
    assert jnp.allclose(out, ref, atol=1e-4, rtol=1e-4), max_err

    print("KERNEL_OK")
</pallas_src>

<mosaic_0001>
module attributes {stable_mosaic.version = 11 : i64} {
  func.func @_attention_kernel(%arg0: i32, %arg1: i32, %arg2: memref<1x8x128xf32, #tpu.memory_space<vmem>>, %arg3: memref<1x128xf32, #tpu.memory_space<vmem>>, %arg4: memref<1x128xf32, #tpu.memory_space<vmem>>, %arg5: memref<1x128x64xf32, #tpu.memory_space<vmem>>, %arg6: memref<1x1x64xf32, #tpu.memory_space<vmem>>, %arg7: memref<1x128x64xf32, #tpu.memory_space<vmem>>, %arg8: memref<1x1x64xf32, #tpu.memory_space<vmem>>, %arg9: memref<1x128x64xf32, #tpu.memory_space<vmem>>, %arg10: memref<1x1x64xf32, #tpu.memory_space<vmem>>, %arg11: memref<1x64x128xf32, #tpu.memory_space<vmem>>, %arg12: memref<1x128xf32, #tpu.memory_space<vmem>>, %arg13: memref<1x8x128xf32, #tpu.memory_space<vmem>>, %arg14: memref<8x128xf32, #tpu.memory_space<vmem>>) attributes {dimension_semantics = [#tpu.dimension_semantics<parallel>, #tpu.dimension_semantics<arbitrary>], iteration_bounds = array<i64: 2, 2>, scalar_prefetch = 0 : i64, scratch_operands = 1 : i64, tpu.core_type = #tpu.core_type<tc>, window_params = [{transform_indices = @transform_0, window_bounds = array<i64: 1, 8, 128>}, {pipeline_mode = #tpu.pipeline_mode<synchronous>, transform_indices = @transform_1, window_bounds = array<i64: 1, 128>}, {pipeline_mode = #tpu.pipeline_mode<synchronous>, transform_indices = @transform_2, window_bounds = array<i64: 1, 128>}, {transform_indices = @transform_3, window_bounds = array<i64: 1, 128, 64>}, {transform_indices = @transform_4, window_bounds = array<i64: 1, 1, 64>}, {transform_indices = @transform_5, window_bounds = array<i64: 1, 128, 64>}, {transform_indices = @transform_6, window_bounds = array<i64: 1, 1, 64>}, {transform_indices = @transform_7, window_bounds = array<i64: 1, 128, 64>}, {transform_indices = @transform_8, window_bounds = array<i64: 1, 1, 64>}, {transform_indices = @transform_9, window_bounds = array<i64: 1, 64, 128>}, {pipeline_mode = #tpu.pipeline_mode<synchronous>, transform_indices = @transform_10, window_bounds = array<i64: 1, 128>}, {transform_indices = @transform_11, window_bounds = array<i64: 1, 8, 128>}]} {
    %c0 = arith.constant 0 : index
    %c0_0 = arith.constant 0 : index
    %c0_1 = arith.constant 0 : index
    %0 = vector.load %arg2[%c0, %c0_0, %c0_1] : memref<1x8x128xf32, #tpu.memory_space<vmem>>, vector<1x8x128xf32>
    %1 = vector.shape_cast %0 : vector<1x8x128xf32> to vector<8x128xf32>
    %cst = arith.constant dense<0.000000e+00> : vector<8xf32>
    %2 = vector.multi_reduction <add>, %1, %cst [1] : vector<8x128xf32> to vector<8xf32>
    %3 = vector.shape_cast %2 : vector<8xf32> to vector<8x1xf32>
    %cst_2 = arith.constant 1.280000e+02 : f32
    %4 = vector.broadcast %cst_2 : f32 to vector<8x1xf32>
    %5 = arith.divf %3, %4 : vector<8x1xf32>
    %6 = vector.broadcast %5 : vector<8x1xf32> to vector<8x128xf32>
    %7 = arith.subf %1, %6 : vector<8x128xf32>
    %8 = arith.mulf %7, %7 : vector<8x128xf32>
    %cst_3 = arith.constant dense<0.000000e+00> : vector<8xf32>
    %9 = vector.multi_reduction <add>, %8, %cst_3 [1] : vector<8x128xf32> to vector<8xf32>
    %10 = vector.shape_cast %9 : vector<8xf32> to vector<8x1xf32>
    %cst_4 = arith.constant 1.280000e+02 : f32
    %11 = vector.broadcast %cst_4 : f32 to vector<8x1xf32>
    %12 = arith.divf %10, %11 : vector<8x1xf32>
    %13 = vector.broadcast %5 : vector<8x1xf32> to vector<8x128xf32>
    %14 = arith.subf %1, %13 : vector<8x128xf32>
    %cst_5 = arith.constant 9.99999974E-6 : f32
    %15 = vector.broadcast %cst_5 : f32 to vector<8x1xf32>
    %16 = arith.addf %12, %15 : vector<8x1xf32>
    %17 = math.rsqrt %16 : vector<8x1xf32>
    %18 = vector.broadcast %17 : vector<8x1xf32> to vector<8x128xf32>
    %19 = arith.mulf %14, %18 : vector<8x128xf32>
    %c0_6 = arith.constant 0 : index
    %c0_7 = arith.constant 0 : index
    %20 = vector.load %arg3[%c0_6, %c0_7] : memref<1x128xf32, #tpu.memory_space<vmem>>, vector<1x128xf32>
    %21 = vector.broadcast %20 : vector<1x128xf32> to vector<8x128xf32>
    %22 = arith.mulf %19, %21 : vector<8x128xf32>
    %c0_8 = arith.constant 0 : index
    %c0_9 = arith.constant 0 : index
    %23 = vector.load %arg4[%c0_8, %c0_9] : memref<1x128xf32, #tpu.memory_space<vmem>>, vector<1x128xf32>
    %24 = vector.broadcast %23 : vector<1x128xf32> to vector<8x128xf32>
    %25 = arith.addf %22, %24 : vector<8x128xf32>
    %c0_10 = arith.constant 0 : index
    %c0_11 = arith.constant 0 : index
    %c0_12 = arith.constant 0 : index
    %26 = vector.load %arg5[%c0_10, %c0_11, %c0_12] : memref<1x128x64xf32, #tpu.memory_space<vmem>>, vector<1x128x64xf32>
    %27 = vector.shape_cast %26 : vector<1x128x64xf32> to vector<128x64xf32>
    %cst_13 = arith.constant dense<0.000000e+00> : vector<8x64xf32>
    %28 = tpu.matmul %25, %27, %cst_13 {dimension_numbers = #tpu.dot_dimension_numbers<[1], [0], [0], [1], [0, 0, 1, 1], [], []>} : vector<8x128xf32>, vector<128x64xf32>, vector<8x64xf32> -> vector<8x64xf32>
    %c0_14 = arith.constant 0 : index
    %c0_15 = arith.constant 0 : index
    %c0_16 = arith.constant 0 : index
    %29 = vector.load %arg6[%c0_14, %c0_15, %c0_16] : memref<1x1x64xf32, #tpu.memory_space<vmem>>, vector<1x1x64xf32>
    %30 = vector.shape_cast %29 : vector<1x1x64xf32> to vector<1x64xf32>
    %31 = vector.broadcast %30 : vector<1x64xf32> to vector<8x64xf32>
    %32 = arith.addf %28, %31 : vector<8x64xf32>
    %c0_17 = arith.constant 0 : index
    %c0_18 = arith.constant 0 : index
    %c0_19 = arith.constant 0 : index
    %33 = vector.load %arg7[%c0_17, %c0_18, %c0_19] : memref<1x128x64xf32, #tpu.memory_space<vmem>>, vector<1x128x64xf32>
    %34 = vector.shape_cast %33 : vector<1x128x64xf32> to vector<128x64xf32>
    %cst_20 = arith.constant dense<0.000000e+00> : vector<8x64xf32>
    %35 = tpu.matmul %25, %34, %cst_20 {dimension_numbers = #tpu.dot_dimension_numbers<[1], [0], [0], [1], [0, 0, 1, 1], [], []>} : vector<8x128xf32>, vector<128x64xf32>, vector<8x64xf32> -> vector<8x64xf32>
    %c0_21 = arith.constant 0 : index
    %c0_22 = arith.constant 0 : index
    %c0_23 = arith.constant 0 : index
    %36 = vector.load %arg8[%c0_21, %c0_22, %c0_23] : memref<1x1x64xf32, #tpu.memory_space<vmem>>, vector<1x1x64xf32>
    %37 = vector.shape_cast %36 : vector<1x1x64xf32> to vector<1x64xf32>
    %38 = vector.broadcast %37 : vector<1x64xf32> to vector<8x64xf32>
    %39 = arith.addf %35, %38 : vector<8x64xf32>
    %c0_24 = arith.constant 0 : index
    %c0_25 = arith.constant 0 : index
    %c0_26 = arith.constant 0 : index
    %40 = vector.load %arg9[%c0_24, %c0_25, %c0_26] : memref<1x128x64xf32, #tpu.memory_space<vmem>>, vector<1x128x64xf32>
    %41 = vector.shape_cast %40 : vector<1x128x64xf32> to vector<128x64xf32>
    %cst_27 = arith.constant dense<0.000000e+00> : vector<8x64xf32>
    %42 = tpu.matmul %25, %41, %cst_27 {dimension_numbers = #tpu.dot_dimension_numbers<[1], [0], [0], [1], [0, 0, 1, 1], [], []>} : vector<8x128xf32>, vector<128x64xf32>, vector<8x64xf32> -> vector<8x64xf32>
    %c0_28 = arith.constant 0 : index
    %c0_29 = arith.constant 0 : index
    %c0_30 = arith.constant 0 : index
    %43 = vector.load %arg10[%c0_28, %c0_29, %c0_30] : memref<1x1x64xf32, #tpu.memory_space<vmem>>, vector<1x1x64xf32>
    %44 = vector.shape_cast %43 : vector<1x1x64xf32> to vector<1x64xf32>
    %45 = vector.broadcast %44 : vector<1x64xf32> to vector<8x64xf32>
    %46 = arith.addf %42, %45 : vector<8x64xf32>
    %cst_31 = arith.constant dense<0.000000e+00> : vector<8x8xf32>
    %47 = tpu.matmul %32, %39, %cst_31 {dimension_numbers = #tpu.dot_dimension_numbers<[1], [1], [0], [0], [0, 0, 1, 0], [], []>} : vector<8x64xf32>, vector<8x64xf32>, vector<8x8xf32> -> vector<8x8xf32>
    %cst_32 = arith.constant 1.250000e-01 : f32
    %48 = vector.broadcast %cst_32 : f32 to vector<8x8xf32>
    %49 = arith.mulf %47, %48 : vector<8x8xf32>
    %cst_33 = arith.constant dense<0xFF800000> : vector<8xf32>
    %50 = vector.multi_reduction <maximumf>, %49, %cst_33 [1] : vector<8x8xf32> to vector<8xf32>
    %51 = vector.shape_cast %50 : vector<8xf32> to vector<8x1xf32>
    %52 = vector.broadcast %51 : vector<8x1xf32> to vector<8x8xf32>
    %53 = arith.subf %49, %52 : vector<8x8xf32>
    %54 = math.exp %53 : vector<8x8xf32>
    %cst_34 = arith.constant dense<0.000000e+00> : vector<8xf32>
    %55 = vector.multi_reduction <add>, %54, %cst_34 [1] : vector<8x8xf32> to vector<8xf32>
    %56 = vector.shape_cast %55 : vector<8xf32> to vector<8x1xf32>
    %57 = vector.broadcast %56 : vector<8x1xf32> to vector<8x8xf32>
    %58 = arith.divf %54, %57 : vector<8x8xf32>
    %cst_35 = arith.constant dense<0.000000e+00> : vector<8x64xf32>
    %59 = tpu.matmul %58, %46, %cst_35 {dimension_numbers = #tpu.dot_dimension_numbers<[1], [0], [0], [1], [0, 0, 1, 1], [], []>} : vector<8x8xf32>, vector<8x64xf32>, vector<8x64xf32> -> vector<8x64xf32>
    %c0_36 = arith.constant 0 : index
    %c0_37 = arith.constant 0 : index
    %c0_38 = arith.constant 0 : index
    %60 = vector.load %arg11[%c0_36, %c0_37, %c0_38] : memref<1x64x128xf32, #tpu.memory_space<vmem>>, vector<1x64x128xf32>
    %61 = vector.shape_cast %60 : vector<1x64x128xf32> to vector<64x128xf32>
    %cst_39 = arith.constant dense<0.000000e+00> : vector<8x128xf32>
    %62 = tpu.matmul %59, %61, %cst_39 {dimension_numbers = #tpu.dot_dimension_numbers<[1], [0], [0], [1], [0, 0, 1, 1], [], []>} : vector<8x64xf32>, vector<64x128xf32>, vector<8x128xf32> -> vector<8x128xf32>
    %c0_i32 = arith.constant 0 : i32
    %63 = arith.cmpi eq, %arg1, %c0_i32 : i32
    %64 = arith.extui %63 : i1 to i32
    %c0_i32_40 = arith.constant 0 : i32
    %65 = arith.cmpi ne, %64, %c0_i32_40 : i32
    scf.if %65 {
      %c0_46 = arith.constant 0 : index
      %c0_47 = arith.constant 0 : index
      %72 = vector.load %arg12[%c0_46, %c0_47] : memref<1x128xf32, #tpu.memory_space<vmem>>, vector<1x128xf32>
      %73 = vector.broadcast %72 : vector<1x128xf32> to vector<8x128xf32>
      %74 = arith.addf %1, %73 : vector<8x128xf32>
      %c0_48 = arith.constant 0 : index
      %c0_49 = arith.constant 0 : index
      %75 = vector.load %arg14[%c0_48, %c0_49] : memref<8x128xf32, #tpu.memory_space<vmem>>, vector<8x128xf32>
      tpu.vector_store %arg14[%c0_48, %c0_49], %74 {strides = array<i32>} : memref<8x128xf32, #tpu.memory_space<vmem>>, vector<8x128xf32>,
    } else {
    }
    %c0_41 = arith.constant 0 : index
    %c0_42 = arith.constant 0 : index
    %66 = vector.load %arg14[%c0_41, %c0_42] : memref<8x128xf32, #tpu.memory_space<vmem>>, vector<8x128xf32>
    %67 = arith.addf %66, %62 : vector<8x128xf32>
    %c0_43 = arith.constant 0 : index
    %c0_44 = arith.constant 0 : index
    %68 = vector.load %arg14[%c0_43, %c0_44] : memref<8x128xf32, #tpu.memory_space<vmem>>, vector<8x128xf32>
    tpu.vector_store %arg14[%c0_43, %c0_44], %67 {strides = array<i32>} : memref<8x128xf32, #tpu.memory_space<vmem>>, vector<8x128xf32>,
    %c1_i32 = arith.constant 1 : i32
    %69 = arith.cmpi eq, %arg1, %c1_i32 : i32
    %70 = arith.extui %69 : i1 to i32
    %c0_i32_45 = arith.constant 0 : i32
    %71 = arith.cmpi ne, %70, %c0_i32_45 : i32
    scf.if %71 {
      %c0_46 = arith.constant 0 : index
      %c0_47 = arith.constant 0 : index
      %72 = vector.load %arg14[%c0_46, %c0_47] : memref<8x128xf32, #tpu.memory_space<vmem>>, vector<8x128xf32>
      %c0_48 = arith.constant 0 : index
      %c0_49 = arith.constant 0 : index
      %c0_50 = arith.constant 0 : index
      %73 = vector.load %arg13[%c0_48, %c0_49, %c0_50] : memref<1x8x128xf32, #tpu.memory_space<vmem>>, vector<1x8x128xf32>
      %74 = vector.shape_cast %73 : vector<1x8x128xf32> to vector<8x128xf32>
      %75 = vector.shape_cast %72 : vector<8x128xf32> to vector<1x8x128xf32>
      tpu.vector_store %arg13[%c0_48, %c0_49, %c0_50], %75 {strides = array<i32>} : memref<1x8x128xf32, #tpu.memory_space<vmem>>, vector<1x8x128xf32>,
    } else {
    }
    return
  }
  func.func @transform_0(%arg0: i32, %arg1: i32) -> (i32, i32, i32) {
    %c0_i32 = arith.constant 0 : i32
    %c0_i32_0 = arith.constant 0 : i32
    %c0_i32_1 = arith.constant 0 : i32
    return %arg0, %c0_i32, %c0_i32_0 : i32, i32, i32
  }
  func.func @transform_1(%arg0: i32, %arg1: i32) -> (i32, i32) {
    %c0_i32 = arith.constant 0 : i32
    %c0_i32_0 = arith.constant 0 : i32
    %c0_i32_1 = arith.constant 0 : i32
    return %c0_i32, %c0_i32_0 : i32, i32
  }
  func.func @transform_2(%arg0: i32, %arg1: i32) -> (i32, i32) {
    %c0_i32 = arith.constant 0 : i32
    %c0_i32_0 = arith.constant 0 : i32
    %c0_i32_1 = arith.constant 0 : i32
    return %c0_i32, %c0_i32_0 : i32, i32
  }
  func.func @transform_3(%arg0: i32, %arg1: i32) -> (i32, i32, i32) {
    %c0_i32 = arith.constant 0 : i32
    %c0_i32_0 = arith.constant 0 : i32
    %c0_i32_1 = arith.constant 0 : i32
    return %arg1, %c0_i32, %c0_i32_0 : i32, i32, i32
  }
  func.func @transform_4(%arg0: i32, %arg1: i32) -> (i32, i32, i32) {
    %c0_i32 = arith.constant 0 : i32
    %c0_i32_0 = arith.constant 0 : i32
    %c0_i32_1 = arith.constant 0 : i32
    return %arg1, %c0_i32, %c0_i32_0 : i32, i32, i32
  }
  func.func @transform_5(%arg0: i32, %arg1: i32) -> (i32, i32, i32) {
    %c0_i32 = arith.constant 0 : i32
    %c0_i32_0 = arith.constant 0 : i32
    %c0_i32_1 = arith.constant 0 : i32
    return %arg1, %c0_i32, %c0_i32_0 : i32, i32, i32
  }
  func.func @transform_6(%arg0: i32, %arg1: i32) -> (i32, i32, i32) {
    %c0_i32 = arith.constant 0 : i32
    %c0_i32_0 = arith.constant 0 : i32
    %c0_i32_1 = arith.constant 0 : i32
    return %arg1, %c0_i32, %c0_i32_0 : i32, i32, i32
  }
  func.func @transform_7(%arg0: i32, %arg1: i32) -> (i32, i32, i32) {
    %c0_i32 = arith.constant 0 : i32
    %c0_i32_0 = arith.constant 0 : i32
    %c0_i32_1 = arith.constant 0 : i32
    return %arg1, %c0_i32, %c0_i32_0 : i32, i32, i32
  }
  func.func @transform_8(%arg0: i32, %arg1: i32) -> (i32, i32, i32) {
    %c0_i32 = arith.constant 0 : i32
    %c0_i32_0 = arith.constant 0 : i32
    %c0_i32_1 = arith.constant 0 : i32
    return %arg1, %c0_i32, %c0_i32_0 : i32, i32, i32
  }
  func.func @transform_9(%arg0: i32, %arg1: i32) -> (i32, i32, i32) {
    %c0_i32 = arith.constant 0 : i32
    %c0_i32_0 = arith.constant 0 : i32
    %c0_i32_1 = arith.constant 0 : i32
    return %arg1, %c0_i32, %c0_i32_0 : i32, i32, i32
  }
  func.func @transform_10(%arg0: i32, %arg1: i32) -> (i32, i32) {
    %c0_i32 = arith.constant 0 : i32
    %c0_i32_0 = arith.constant 0 : i32
    %c0_i32_1 = arith.constant 0 : i32
    return %c0_i32, %c0_i32_0 : i32, i32
  }
  func.func @transform_11(%arg0: i32, %arg1: i32) -> (i32, i32, i32) {
    %c0_i32 = arith.constant 0 : i32
    %c0_i32_0 = arith.constant 0 : i32
    %c0_i32_1 = arith.constant 0 : i32
    return %arg0, %c0_i32, %c0_i32_0 : i32, i32, i32
  }
}

</mosaic_0001>

<bundles_post_ra>
// kernel: tpu_custom_call.1
= control target key start
LH: loop header
LB: loop body
LE: loop exit
PB: predicated region body
PF: predicated region fallthrough
CT: control target
= control target key end

     0   :  { %s2030_s0 = inlined_call_operand.vmem [shape: f32[2,8,128], index: 0, kind: input, shape index: {}]   ;;  %s2031_s1 = inlined_call_operand.vmem [shape: f32[1,128], index: 1, kind: input, shape index: {}]   ;;  %s2032_s2 = inlined_call_operand.vmem [shape: f32[1,128], index: 2, kind: input, shape index: {}]   ;;  %s2033_s3 = inlined_call_operand.vmem [shape: f32[2,128,64], index: 3, kind: input, shape index: {}]   ;;  %s2034_s4 = inlined_call_operand.vmem [shape: f32[2,1,64], index: 4, kind: input, shape index: {}]   ;;  %s2035_s5 = inlined_call_operand.vmem [shape: f32[2,128,64], index: 5, kind: input, shape index: {}]   ;;  %s2036_s6 = inlined_call_operand.vmem [shape: f32[2,1,64], index: 6, kind: input, shape index: {}]   ;;  %s2037_s7 = inlined_call_operand.vmem [shape: f32[2,128,64], index: 7, kind: input, shape index: {}]   ;;  %s2038_s8 = inlined_call_operand.vmem [shape: f32[2,1,64], index: 8, kind: input, shape index: {}]   ;;  %s2039_s9 = inlined_call_operand.vmem [shape: f32[2,64,128], index: 9, kind: input, shape index: {}]   ;;  %s2040_s10 = inlined_call_operand.vmem [shape: f32[1,128], index: 10, kind: input, shape index: {}]   ;;  %s2041_s11 = inlined_call_operand.hbm [shape: f32[2,8,128], index: 11, kind: output, shape index: {}]  }
   0x1   :  { %2044 = sst [smem:[#allocation8_spill]] %s2030_s0 }
   0x2   :  { %2045 = sst [smem:[#allocation9_spill]] %s2031_s1 }
   0x3   :  { %2046 = sst [smem:[#allocation10_spill]] %s2033_s3 }
   0x4   :  { %16 = vsyncpa [#allocation4], 0 }
   0x5   :  { %18 = vsyncpa [#allocation4 + $0x1], 0  ;;  %s1718_s17 = smov 0   ;;  %s1720_s18 = smov 0  }
   0x6   :  { %s1722_s19 = smov 0   ;;  %s1724_s20 = smov 0  }
   0x7   :  { %s1726_s21 = smov 0   ;;  %s1728_s22 = smov 0  }
   0x8   :  { %s1730_s23 = smov 0   ;;  %s1732_s24 = smov 0  }
   0x9 LB: > { %s1249_s25 = sadd.s32 4294967295, %s1653_s24   ;;  %s1250_s26 = sadd.s32 4294967294, %s1653_s24   ;;  %s1653_s24 = sphi %s1732_s24, %s24_s24   ;;  %s1649_s23 = sphi %s1730_s23, %s2063_s23   ;;  %s1645_s22 = sphi %s1728_s22, %s2062_s22   ;;  %s1641_s21 = sphi %s1726_s21, %s2061_s21   ;;  %s1637_s20 = sphi %s1724_s20, %s2060_s20   ;;  %s1633_s19 = sphi %s1722_s19, %s2059_s19   ;;  %s1629_s18 = sphi %s1720_s18, %s2058_s18   ;;  %s1625_s17 = sphi %s1718_s17, %s2057_s17  }
   0xa   : > { %s33_s27 = sadd.s32 1, %s1645_s22  ;;  %s36_s28 = sadd.s32 1, %s1649_s23 }
   0xb   : > { %p34_p0 = scmp.ge.s32.totalorder %s33_s27, 2  ;;  %p324_p1 = scmp.ne.s32.totalorder %s1633_s19, %s1629_s18 }
   0xc   : > { %p325_p2 = scmp.eq.s32.totalorder %s1249_s25, 3  ;;  %p330_p4 = scmp.ne.s32.totalorder %s1629_s18, %s1625_s17 }
   0xd   : > { %s2065_s27 = smov (%p34_p0, %s33_s27), 0  ;;  %s2067_s28 = smov (!%p34_p0, %s36_s28), %s1649_s23 }
   0xe   : > { %2047 = sst [smem:[#allocation6_spill]] %s2065_s27  ;;  %p1767_p3 = por %p325_p2, %p324_p1 }
   0xf   : > { %p38_p5 = scmp.ge.s32.totalorder %s2067_s28, 2  ;;  %p331_p6 = scmp.eq.s32.totalorder %s1250_s26, 3 }
  0x10   : > { %p1253_p7 = scmp.ge.s32.totalorder %s1653_s24, 1  ;;  %p415_p8 = scmp.lt.s32.totalorder %s1653_s24, 5 }
  0x11   : > { %s2069_s28 = smov (%p38_p5, %s2067_s28), 0  ;;  %p1777_p9 = por %p331_p6, %p330_p4 }
  0x12   : > { %2049 = sst [smem:[#allocation7_spill]] %s2069_s28  ;;  %p416_p10 = pnand %p1253_p7, %p415_p8 }
  0x13   : > { %s311_s12 = ssub.s32 %s1649_s23, %s2069_s28  ;;  %s314_s13 = sadd.s32 1, %s1633_s19 }
  0x14   : > { %p312_p11 = scmp.eq.s32.totalorder %s311_s12, 0  ;;  %419 = sbr.rel (%p416_p10) target bundleno = 1475 (0x5c3), region = 64 }
  0x15   : > { %p483_p12 = scmp.lt.s32.totalorder (!%p416_p10), %s1641_s21, 1  ;;  %s2051_s0 = sld [smem:[#allocation8_spill]] (!%p416_p10) }
  0x16   : > { %s1785_s14 = scalar_select %p312_p11, %s1633_s19, %s314_s13  }
  0x17   : > { %s2043_s12 = sand.u32 (!%p416_p10), 1, %s1629_s18   ;;  %p487_p13 = scmp.lt.s32.totalorder (!%p416_p10), %s1637_s20, 1 }
  0x18   : > { %s1799_s13 = sshll.u32 (!%p416_p10), %s2043_s12, 3  ;;  %s2052_s3 = sld [smem:[#allocation10_spill]] (!%p416_p10) }
  0x19   : > { %s484_s15 = scalar_select %p483_p12, %s1641_s21, 1  ;;  %v1655_v1 = vmov 0.0   ;;  %vm1656_vm0 = vmmov 0   ;;  %v1265_v44 = vld [vmem:[%s2032_s2] ss:$0 sm:$0xff]  ;;  %vm824_vm1 = vcmask 523264  }
  0x1a   : > { %1348 = vmatprep.subr.mxu0 %v1655_v1  ;;  %1383 = vmatprep.subr.mxu1 %v1655_v1  ;;  %s1804_s28 = scalar_select %p487_p13, %s1637_s20, 1  ;;  %vm902_vm2 = vcmask 64512  }
  0x1b   : > { %s1255_s16 = sshll.u32 %s484_s15, 3  ;;  %1380 = vmatprep.mubr.msk.f32.mxu0 %vm1656_vm0, %v1655_v1  ;;  %1415 = vmatprep.mubr.msk.f32.mxu1 %vm1656_vm0, %v1655_v1  ;;  %s2053_s1 = sld [smem:[#allocation9_spill]] }
  0x1c   : > { %s486_s27 = scalar_lea.vmem %s2051_s0, %s1255_s16  ;;  %s1807_s15 = sshll.u32 %s1804_s28, 7 }
  0x1d   : > { %v1792_v0 = vld [vmem:[%s486_s27] sm:$0xff]  ;;  %s1819_s0 = scalar_lea.vmem %s2035_s5, %s1807_s15  ;;  %s502_s12 = scalar_lea.vmem %s2036_s6, %s1804_s28 }
  0x1e   : > { %517 = vadd.xlane.f32.xlu0 %v1792_v0  ;;  %s1813_s25 = scalar_lea.vmem %s2052_s3, %s1807_s15  ;;  %v653_v3 = vld [vmem:[%s1819_s0 + $0x78] sm:$0xff]  ;;  %v652_v5 = vld [vmem:[%s1819_s0 + $0x70] sm:$0xff]  ;;  %v651_v7 = vld [vmem:[%s1819_s0 + $0x68] sm:$0xff]  ;;  %s1905_s3 = scalar_lea.vmem %s2037_s7, %s1807_s15 }
  0x1f   : > { %v560_v2 = vld [vmem:[%s1813_s25 + $0x78] sm:$0xff]  ;;  %v559_v4 = vld [vmem:[%s1813_s25 + $0x70] sm:$0xff]  ;;  %1384 = vmatpush3.msra.mxu1 %v653_v3  ;;  %v558_v6 = vld [vmem:[%s1813_s25 + $0x68] sm:$0xff]  ;;  %s510_s15 = scalar_lea.vmem %s2038_s8, %s1804_s28  ;;  %p1273_p0 = scmp.ne.s32.totalorder %s1637_s20, 0 }
  0x20   : > { %1349 = vmatpush3.msra.mxu0 %v560_v2  ;;  %1385 = vmatprep.subr.mxu1 %v1655_v1  ;;  %v557_v8 = vld [vmem:[%s1813_s25 + $0x60] sm:$0xff]  ;;  %v556_v14 = vld [vmem:[%s1813_s25 + $0x58] sm:$0xff]  ;;  %v555_v16 = vld [vmem:[%s1813_s25 + $0x50] sm:$0xff] }
  0x21   : > { %1350 = vmatprep.subr.mxu0 %v1655_v1  ;;  %1386 = vmatpush3.msra.mxu1 %v652_v5  ;;  %v650_v9 = vld [vmem:[%s1819_s0 + $0x60] sm:$0xff]  ;;  %v649_v15 = vld [vmem:[%s1819_s0 + $0x58] sm:$0xff]  ;;  %v648_v17 = vld [vmem:[%s1819_s0 + $0x50] sm:$0xff] }
  0x22   : > { %1351 = vmatpush3.msra.mxu0 %v559_v4  ;;  %1387 = vmatprep.subr.mxu1 %v1655_v1  ;;  %v554_v18 = vld [vmem:[%s1813_s25 + $0x48] sm:$0xff]  ;;  %v553_v20 = vld [vmem:[%s1813_s25 + $0x40] sm:$0xff]  ;;  %v552_v22 = vld [vmem:[%s1813_s25 + $0x38] sm:$0xff] }
  0x23   : > { %1352 = vmatprep.subr.mxu0 %v1655_v1  ;;  %1388 = vmatpush3.msra.mxu1 %v651_v7  ;;  %v647_v19 = vld [vmem:[%s1819_s0 + $0x48] sm:$0xff]  ;;  %v646_v21 = vld [vmem:[%s1819_s0 + $0x40] sm:$0xff]  ;;  %v645_v23 = vld [vmem:[%s1819_s0 + $0x38] sm:$0xff] }
  0x24   : > { %1353 = vmatpush3.msra.mxu0 %v558_v6  ;;  %1389 = vmatprep.subr.mxu1 %v1655_v1  ;;  %v551_v24 = vld [vmem:[%s1813_s25 + $0x30] sm:$0xff]  ;;  %v550_v26 = vld [vmem:[%s1813_s25 + $0x28] sm:$0xff]  ;;  %v549_v28 = vld [vmem:[%s1813_s25 + $0x20] sm:$0xff] }
  0x25   : > { %1354 = vmatprep.subr.mxu0 %v1655_v1  ;;  %1390 = vmatpush3.msra.mxu1 %v650_v9  ;;  %v644_v25 = vld [vmem:[%s1819_s0 + $0x30] sm:$0xff]  ;;  %v643_v27 = vld [vmem:[%s1819_s0 + $0x28] sm:$0xff]  ;;  %v642_v29 = vld [vmem:[%s1819_s0 + $0x20] sm:$0xff] }
  0x26   : > { %1355 = vmatpush3.msra.mxu0 %v557_v8  ;;  %1391 = vmatprep.subr.mxu1 %v1655_v1  ;;  %v548_v30 = vld [vmem:[%s1813_s25 + $0x18] sm:$0xff]  ;;  %v547_v32 = vld [vmem:[%s1813_s25 + $0x10] sm:$0xff]  ;;  %v546_v34 = vld [vmem:[%s1813_s25 + $0x8] sm:$0xff] }
  0x27   : > { %1356 = vmatprep.subr.mxu0 %v1655_v1  ;;  %1392 = vmatpush3.msra.mxu1 %v649_v15  ;;  %v641_v31 = vld [vmem:[%s1819_s0 + $0x18] sm:$0xff]  ;;  %v640_v33 = vld [vmem:[%s1819_s0 + $0x10] sm:$0xff]  ;;  %v639_v35 = vld [vmem:[%s1819_s0 + $0x8] sm:$0xff] }
  0x28   : > { %1357 = vmatpush3.msra.mxu0 %v556_v14  ;;  %1393 = vmatprep.subr.mxu1 %v1655_v1  ;;  %v545_v36 = vld [vmem:[%s1813_s25] sm:$0xff]  ;;  %v746_v47 = vld [vmem:[%s1905_s3 + $0x78] sm:$0xff]  ;;  %v745_v48 = vld [vmem:[%s1905_s3 + $0x70] sm:$0xff]  ;;  %s494_s25 = scalar_lea.vmem %s2034_s4, %s1804_s28 }
  0x29   : > { %1358 = vmatprep.subr.mxu0 %v1655_v1  ;;  %1394 = vmatpush3.msra.mxu1 %v648_v17  ;;  %v638_v37 = vld [vmem:[%s1819_s0] sm:$0xff]  ;;  %v744_v49 = vld [vmem:[%s1905_s3 + $0x68] sm:$0xff]  ;;  %v742_v51 = vld [vmem:[%s1905_s3 + $0x58] sm:$0xff]  ;;  %s1283_s0 = sshll.u32 %s1804_s28, 6  ;;  %s482_s28 = scalar_lea.vmem [#allocation3], %s1799_s13 }
  0x2a   : > { %1359 = vmatpush3.msra.mxu0 %v555_v16  ;;  %1395 = vmatprep.subr.mxu1 %v1655_v1  ;;  %v1264_v42 = vld [vmem:[%s2053_s1] ss:$0 sm:$0xff]  ;;  %v741_v52 = vld [vmem:[%s1905_s3 + $0x50] sm:$0xff]  ;;  %v740_v53 = vld [vmem:[%s1905_s3 + $0x48] sm:$0xff]  ;;  %s515_s16 = scalar_lea.vmem %s2039_s9, %s1283_s0 }
  0x2b   : > { %1360 = vmatprep.subr.mxu0 %v1655_v1  ;;  %1396 = vmatpush3.msra.mxu1 %v647_v19  ;;  %v743_v50 = vld [vmem:[%s1905_s3 + $0x60] sm:$0xff]  ;;  %v738_v55 = vld [vmem:[%s1905_s3 + $0x38] sm:$0xff]  ;;  %v737_v56 = vld [vmem:[%s1905_s3 + $0x30] sm:$0xff] }
  0x2c   : > { %1361 = vmatpush3.msra.mxu0 %v554_v18  ;;  %1397 = vmatprep.subr.mxu1 %v1655_v1  ;;  %v739_v54 = vld [vmem:[%s1905_s3 + $0x40] sm:$0xff]  ;;  %v736_v57 = vld [vmem:[%s1905_s3 + $0x28] sm:$0xff]  ;;  %v734_v59 = vld [vmem:[%s1905_s3 + $0x18] sm:$0xff] }
  0x2d   : > { %1362 = vmatprep.subr.mxu0 %v1655_v1  ;;  %1398 = vmatpush3.msra.mxu1 %v646_v21  ;;  %v735_v58 = vld [vmem:[%s1905_s3 + $0x20] sm:$0xff]  ;;  %v733_v60 = vld [vmem:[%s1905_s3 + $0x10] sm:$0xff]  ;;  %v732_v61 = vld [vmem:[%s1905_s3 + $0x8] sm:$0xff] }
  0x2e   : > { %1363 = vmatpush3.msra.mxu0 %v553_v20  ;;  %1399 = vmatprep.subr.mxu1 %v1655_v1  ;;  %v731_v62 = vld [vmem:[%s1905_s3] sm:$0xff] }
  0x2f   : > { %1364 = vmatprep.subr.mxu0 %v1655_v1  ;;  %1400 = vmatpush3.msra.mxu1 %v645_v23  ;;  %v1267_v63 = vld [vmem:[%s502_s12] ss:$0 sm:$0xff] }
  0x30   : > { %1365 = vmatpush3.msra.mxu0 %v552_v22  ;;  %1401 = vmatprep.subr.mxu1 %v1655_v1  ;;  %v1266_v4 = vld [vmem:[%s494_s25] ss:$0 sm:$0xff] }
  0x31   : > { %1366 = vmatprep.subr.mxu0 %v1655_v1  ;;  %1402 = vmatpush3.msra.mxu1 %v644_v25  ;;  %v1268_v9 = vld [vmem:[%s510_s15] ss:$0 sm:$0xff]  ;;  %v994_v25 = vld [vmem:[%s515_s16 + $0x38] sm:$0xff] }
  0x32   : > { %1367 = vmatpush3.msra.mxu0 %v551_v24  ;;  %1403 = vmatprep.subr.mxu1 %v1655_v1 }
  0x33   : > { %1368 = vmatprep.subr.mxu0 %v1655_v1  ;;  %1404 = vmatpush3.msra.mxu1 %v643_v27  ;;  %v992_v27 = vld [vmem:[%s515_s16 + $0x28] sm:$0xff] }
  0x34   : > { %1369 = vmatpush3.msra.mxu0 %v550_v26  ;;  %1405 = vmatprep.subr.mxu1 %v1655_v1  ;;  %v993_v26 = vld [vmem:[%s515_s16 + $0x30] sm:$0xff] }
  0x35   : > { %1370 = vmatprep.subr.mxu0 %v1655_v1  ;;  %1406 = vmatpush3.msra.mxu1 %v642_v29  ;;  %v990_v29 = vld [vmem:[%s515_s16 + $0x18] sm:$0xff] }
  0x36   : > { %1371 = vmatpush3.msra.mxu0 %v549_v28  ;;  %1407 = vmatprep.subr.mxu1 %v1655_v1  ;;  %v991_v28 = vld [vmem:[%s515_s16 + $0x20] sm:$0xff] }
  0x37   : > { %1372 = vmatprep.subr.mxu0 %v1655_v1  ;;  %1408 = vmatpush3.msra.mxu1 %v641_v31  ;;  %v988_v31 = vld [vmem:[%s515_s16 + $0x8] sm:$0xff] }
  0x38   : > { %1373 = vmatpush3.msra.mxu0 %v548_v30  ;;  %1409 = vmatprep.subr.mxu1 %v1655_v1  ;;  %v989_v30 = vld [vmem:[%s515_s16 + $0x10] sm:$0xff] }
  0x39   : > { %1374 = vmatprep.subr.mxu0 %v1655_v1  ;;  %1410 = vmatpush3.msra.mxu1 %v640_v33 }
  0x3a   : > { %1375 = vmatpush3.msra.mxu0 %v547_v32  ;;  %1411 = vmatprep.subr.mxu1 %v1655_v1  ;;  %v987_v32 = vld [vmem:[%s515_s16] sm:$0xff] }
  0x3b   : > { %1376 = vmatprep.subr.mxu0 %v1655_v1  ;;  %1412 = vmatpush3.msra.mxu1 %v639_v35 }
  0x3c   : > { %1377 = vmatpush3.msra.mxu0 %v546_v34  ;;  %1413 = vmatprep.subr.mxu1 %v1655_v1 }
  0x3d   : > { %1378 = vmatprep.subr.mxu0 %v1655_v1  ;;  %1414 = vmatpush3.msra.mxu1 %v638_v37 }
  0x3e   : > { %1379 = vmatpush3.msra.mxu0 %v545_v36  ;;  %1453 = vmatprep.subr.mxu1 %v1655_v1 }
  0x3f   : > { %1418 = vmatprep.subr.mxu0 %v1655_v1 }
  0xa7   : > { %v518_v10 = vpop.xlane.xlu0 %517 }
  0xa8   : > { %v520_v11 = vmul.f32 0.0078125, %v518_v10 }
  0xaa   : > { %v1838_v12 = vsub.f32 %v1792_v0, %v520_v11 }
  0xac   : > { %v522_v13 = vmul.f32 %v1838_v12, %v1838_v12 }
  0xae   : > { %523 = vadd.xlane.f32.xlu0 %v522_v13 }
 0x137   : > { %v524_v38 = vpop.xlane.xlu0 %523 }
 0x138   : > { %v525_v39 = vmul.f32 0.0078125, %v524_v38 }
 0x13a   : > { %v526_v40 = vadd.f32 1e-05, %v525_v39 }
 0x13c   : > { %1555 = vrsqrt.f32 %v526_v40 }
 0x149   : > { %v1556_v41 = vpop.eup %1555 }
 0x14a   : > { %v528_v43 = vmul.f32 %v1556_v41, %v1838_v12 }
 0x14c   : > { %v536_v45 = vmul.f32 %v1264_v42, %v528_v43 }
 0x14e   : > { %v544_v46 = vadd.f32 %v1265_v44, %v536_v45 }
 0x150   : > { %1381 = vmatmul.mubr.f32.vlgmr.msra.gmra.mxu0 %v544_v46  ;;  %1416 = vmatmul.mubr.f32.vlgmr.msra.gmra.mxu1 %v544_v46 }
 0x151   : > { %1419 = vmatpush3.msra.mxu0 %v746_v47  ;;  %1450 = vmatprep.mubr.msk.f32.mxu0 %vm1656_vm0, %v1655_v1 }
 0x152   : > { %1420 = vmatprep.subr.mxu0 %v1655_v1  ;;  %1455 = vmatprep.mubr.msk.f32.mxu1 %vm1656_vm0, %v1655_v1 }
 0x153   : > { %1421 = vmatpush3.msra.mxu0 %v745_v48 }
 0x154   : > { %1422 = vmatprep.subr.mxu0 %v1655_v1 }
 0x155   : > { %1423 = vmatpush3.msra.mxu0 %v744_v49 }
 0x156   : > { %1424 = vmatprep.subr.mxu0 %v1655_v1 }
 0x157   : > { %1425 = vmatpush3.msra.mxu0 %v743_v50 }
 0x158   : > { %1426 = vmatprep.subr.mxu0 %v1655_v1 }
 0x159   : > { %1427 = vmatpush3.msra.mxu0 %v742_v51 }
 0x15a   : > { %1428 = vmatprep.subr.mxu0 %v1655_v1 }
 0x15b   : > { %1429 = vmatpush3.msra.mxu0 %v741_v52 }
 0x15c   : > { %1430 = vmatprep.subr.mxu0 %v1655_v1 }
 0x15d   : > { %1431 = vmatpush3.msra.mxu0 %v740_v53 }
 0x15e   : > { %1432 = vmatprep.subr.mxu0 %v1655_v1 }
 0x15f   : > { %1433 = vmatpush3.msra.mxu0 %v739_v54 }
 0x160   : > { %1434 = vmatprep.subr.mxu0 %v1655_v1 }
 0x161   : > { %1435 = vmatpush3.msra.mxu0 %v738_v55 }
 0x162   : > { %1436 = vmatprep.subr.mxu0 %v1655_v1 }
 0x163   : > { %1437 = vmatpush3.msra.mxu0 %v737_v56 }
 0x164   : > { %1438 = vmatprep.subr.mxu0 %v1655_v1 }
 0x165   : > { %1439 = vmatpush3.msra.mxu0 %v736_v57 }
 0x166   : > { %1440 = vmatprep.subr.mxu0 %v1655_v1 }
 0x167   : > { %1441 = vmatpush3.msra.mxu0 %v735_v58 }
 0x168   : > { %1442 = vmatprep.subr.mxu0 %v1655_v1 }
 0x169   : > { %1443 = vmatpush3.msra.mxu0 %v734_v59 }
 0x16a   : > { %1444 = vmatprep.subr.mxu0 %v1655_v1 }
 0x16b   : > { %1445 = vmatpush3.msra.mxu0 %v733_v60 }
 0x16c   : > { %1446 = vmatprep.subr.mxu0 %v1655_v1 }
 0x16d   : > { %1447 = vmatpush3.msra.mxu0 %v732_v61 }
 0x16e   : > { %1448 = vmatprep.subr.mxu0 %v1655_v1 }
 0x16f   : > { %1449 = vmatpush3.msra.mxu0 %v731_v62 }
 0x170   : > { %1451 = vmatmul.mubr.f32.vlgmr.msra.gmra.mxu0 %v544_v46 }
 0x210   : > { %v634_v2 = vpop.f32.mrf.mxu0  ;;  %v727_v3 = vpop.f32.mrf.mxu1 }
 0x211   : > { %v728_v5 = vadd.f32 %v1267_v63, %v727_v3  ;;  %v635_v8 = vadd.f32 %v1266_v4, %v634_v2 }
 0x212   : > { %v1382_v6 = vpop.f32.mrf.mxu0  ;;  %v1417_v7 = vpop.f32.mrf.mxu1 }
 0x213   : > { %1454 = vmatpush3.xpose.msk.msra.mxu1 %vm824_vm1, %v728_v5 }
 0x214   : > { %1458 = vmatprep.subr.mxu1 %v1655_v1 }
 0x216   : > { %1456 = vmatmul.mubr.msk.f32.vlgmr.msra.gmra.mxu1 %vm824_vm1, %v635_v8 }
 0x217   : > { %1460 = vmatprep.mubr.msk.f32.mxu1 %vm1656_vm0, %v1655_v1 }
 0x230   : > { %v820_v10 = vpop.f32.mrf.mxu0 }
 0x231   : > { %v821_v11 = vadd.f32 %v1268_v9, %v820_v10 }
 0x232   : > { %v1452_v12 = vpop.f32.mrf.mxu0 }
 0x233   : > { %1459 = vmatpush3.msra.mxu1 %v821_v11 }
 0x234   : > { %1463 = vmatprep.subr.mxu1 %v1655_v1 }
 0x2d6   : > { %v897_v13 = vpop.f32.mrf.mxu1 }
 0x2d7   : > { %v901_v14 = vmul.f32 0.125, %v897_v13 }
 0x2d8   : > { %v1457_v15 = vpop.f32.mrf.mxu1 }
 0x2d9   : > { %v903_v16 = vsel %vm902_vm2, %v901_v14, -inf }
 0x2da   : > { %904 = vmax.xlane.f32.xlu1 %v903_v16 }
 0x363   : > { %v905_v17 = vpop.xlane.xlu1 %904 }
 0x364   : > { %v906_v18 = vsub.f32 %v901_v14, %v905_v17 }
 0x366   : > { %v907_v19 = vmul.f32 1.442695, %v906_v18 }
 0x368   : > { %1557 = vpow2.f32 %v907_v19 }
 0x375   : > { %v1558_v20 = vpop.eup %1557 }
 0x376   : > { %v909_v21 = vsel %vm902_vm2, %v1558_v20, 0.0 }
 0x377   : > { %910 = vadd.xlane.f32.xlu1 %v909_v21 }
 0x400   : > { %v911_v22 = vpop.xlane.xlu1 %910 }
 0x401   : > { %1559 = vrcp.f32 %v911_v22 }
 0x40e   : > { %v1560_v23 = vpop.eup %1559 }
 0x40f   : > { %v913_v24 = vmul.f32 %v1560_v23, %v1558_v20 }
 0x411   : > { %1461 = vmatmul.mubr.msk.f32.vlgmr.msra.gmra.mxu1 %vm902_vm2, %v913_v24 }
 0x412   : > { %1464 = vmatpush3.msra.mxu1 %v994_v25  ;;  %1479 = vmatprep.mubr.msk.f32.mxu1 %vm1656_vm0, %v1655_v1 }
 0x413   : > { %1465 = vmatprep.subr.mxu1 %v1655_v1 }
 0x414   : > { %1466 = vmatpush3.msra.mxu1 %v993_v26 }
 0x415   : > { %1467 = vmatprep.subr.mxu1 %v1655_v1 }
 0x416   : > { %1468 = vmatpush3.msra.mxu1 %v992_v27 }
 0x417   : > { %1469 = vmatprep.subr.mxu1 %v1655_v1 }
 0x418   : > { %1470 = vmatpush3.msra.mxu1 %v991_v28 }
 0x419   : > { %1471 = vmatprep.subr.mxu1 %v1655_v1 }
 0x41a   : > { %1472 = vmatpush3.msra.mxu1 %v990_v29 }
 0x41b   : > { %1473 = vmatprep.subr.mxu1 %v1655_v1 }
 0x41c   : > { %1474 = vmatpush3.msra.mxu1 %v989_v30 }
 0x41d   : > { %1475 = vmatprep.subr.mxu1 %v1655_v1 }
 0x41e   : > { %1476 = vmatpush3.msra.mxu1 %v988_v31 }
 0x41f   : > { %1477 = vmatprep.subr.mxu1 %v1655_v1 }
 0x420   : > { %1478 = vmatpush3.msra.mxu1 %v987_v32 }
 0x4d1   : > { %v983_v33 = vpop.f32.mrf.mxu1 }
 0x4d2   : > { %1480 = vmatmul.mubr.msk.f32.vlgmr.msra.gmra.mxu1 %vm824_vm1, %v983_v33 }
 0x4d3   : > { %v1462_v34 = vpop.f32.mrf.mxu1 }
 0x590   : > { %1071 = sbr.rel (%p1273_p0) target bundleno = 1433 (0x599), region = 68 }
 0x592   : > { %v1064_v35 = vpop.f32.mrf.mxu1 }
 0x594   : > { %v1481_v36 = vpop.f32.mrf.mxu1 }
 0x595   : > { %v1274_v37 = vld [vmem:[%s2040_s10] ss:$0 sm:$0xff] }
 0x596   : > { %v1079_v38 = vadd.f32 %v1274_v37, %v1792_v0 }
 0x598   : > { %1080 = vst [vmem:[#allocation2] sm:$0xff] %v1079_v38 }
 0x599 PF: > { %p1275_p1 = scmp.ne.s32.totalorder %s1637_s20, 1 }
 0x59e   : > { %1087 = sbr.rel (%p1275_p1) target bundleno = 1451 (0x5ab), region = 72 }
 0x59f   : > { %v1081_v1 = vld [vmem:[#allocation2] sm:$0xff] }
 0x5a0   : > { %v1082_v39 = vadd.f32 %v1081_v1, %v1064_v35 }
 0x5a2   : > { %1083 = vst [vmem:[#allocation2] sm:$0xff] %v1082_v39 }
 0x5a9   : > { %v1088_v40 = vld [vmem:[#allocation2] sm:$0xff] }
 0x5aa   : > { %1089 = vst [vmem:[%s482_s28] sm:$0xff] %v1088_v40 }
 0x5ab PF: > { %s1277_s13 = sshll.u32 %s1641_s21, 7  ;;  %s1104_s12 = sshll.u32 %s482_s28, 4  ;;  %s1105_s12 = int_to_ptr.vmem [resolvable:$true] %s1104_s12 }
 0x5ac   : > { %s1102_s0 = scalar_lea.hbm %s2041_s11, %s1277_s13  ;;  %s2054_s27 = sand.u32 1, %s1629_s18  }
 0x5ad   : > { %s1091_s16 = scalar_lea.sflag [#allocation4], %s2054_s27  ;;  %s1561_s25 = scalar_lea.vmem %s1105_s12, 128 }
 0x5ae   : > { %p1562_p2 = scmp.ne.s32.totalorder %s1105_s12, %s1561_s25  ;;  %s1657_s20 = smov [#allocation3]  }
 0x5af   : > { %s1565_s3 = sshll.u32 %s1657_s20, 4  ;;  %s1566_s3 = int_to_ptr.vmem [resolvable:$false] %s1565_s3 }
 0x5b0   : > { %p1563_p4 = pnand %p1562_p2, %p1767_p3  ;;  %s1567_s1 = scalar_lea.vmem %s1566_s3, 256 }
 0x5b1   : > { %p1568_p6 = scmp.lt.s32.totalorder %s1105_s12, %s1566_s3  ;;  %p1569_p7 = scmp.lt.s32.totalorder %s1567_s1, %s1561_s25 }
 0x5b2   : > { %p1564_p5 = pneg %p1563_p4 }
 0x5b3   : > { %p1570_p8 = por %p1569_p7, %p1568_p6 }
 0x5b5   : > { %p1571_p10 = pnand %p1570_p8, %p1564_p5 }
 0x5b7   : > { %1574 = shalt.err (!%p1571_p10)
}
 0x5b8   : > { %s1575_s21 = scalar_lea.hbm %s1102_s0, 128  ;;  %s1579_s26 = scalar_lea.hbm %s2041_s11, 256 }
 0x5b9   : > { %p1576_p11 = scmp.ne.s32.totalorder %s1102_s0, %s1575_s21  ;;  %p1580_p0 = scmp.lt.s32.totalorder %s1102_s0, %s2041_s11 }
 0x5ba   : > { %p1581_p1 = scmp.lt.s32.totalorder %s1579_s26, %s1575_s21 }
 0x5bb   : > { %p1577_p12 = pnand %p1576_p11, %p1767_p3 }
 0x5bc   : > { %p1582_p2 = por %p1581_p1, %p1580_p0 }
 0x5bd   : > { %p1578_p13 = pneg %p1577_p12 }
 0x5bf   : > { %p1583_p4 = pnand %p1582_p2, %p1578_p13 }
 0x5c1   : > { %1586 = shalt.err (!%p1583_p4)
}
 0x5c2   : > { %1482 = dma.vmem_to_hbm [thread:$0]  (%p1767_p3), %s1105_s12, 128, %s1102_s0, %s1091_s16  }
 0x5c3 PF: > { %p1488_p5 = scmp.ge.s32.totalorder %s1653_s24, 2  ;;  %s1116_s1 = sand.u32 1, %s1625_s17  }
 0x5c4   : > { %s1117_s25 = scalar_lea.sflag [#allocation4], %s1116_s1 }
 0x5c5   : > { %p1485_p6 = pnand %p1488_p5, %p1777_p9 }
 0x5c7   : > { %p1486_p7 = pneg %p1485_p6 }
 0x5c9   : > { %1620 = dma.done.wait (%p1486_p7), %s1117_s25, 128  }
 0x5ca   : > { %1622 = vsyncadd (%p1486_p7), %s1117_s25, 4294967168  ;;  %s24_s24 = sadd.s32 1, %s1653_s24   ;;  %s2055_s29 = sld [smem:[#allocation6_spill]] }
 0x5cb   : > { %p21_p8 = scmp.ge.s32.totalorder %s24_s24, 6   ;;  %s2056_s0 = sld [smem:[#allocation7_spill]] }
 0x5cc   : > { %s2057_s17 = smov %s1629_s18  ;;  %s2058_s18 = smov %s1633_s19 }
 0x5cd   : > { %s2059_s19 = smov %s1785_s14  ;;  %s2060_s20 = smov %s1645_s22 }
 0x5ce   : > { %s2061_s21 = smov %s1649_s23  ;;  %23 = sbr.rel (!%p21_p8) target bundleno = 9 (0x9), region = 128 }
 0x5d0   : > { %s2062_s22 = smov %s2055_s29 }
 0x5d1   : > { %s2063_s23 = smov %s2056_s0 }
 0x5d3   :  { %1122 = vsyncpa [#allocation4], 1 }
 0x5d4   :  { %1124 = vsyncpa [#allocation4 + $0x1], 1 }

</bundles_post_ra>
